<compile_context>
chip_gen: v7x
topology: tpu7x:2x2x1
jax: 0.10.0
libtpu: 0.0.40
codegen_flags: <defaults>
</compile_context>

<pallas_src>
import jax
import jax.numpy as jnp
from jax.experimental import pallas as pl
from jax.experimental.pallas import tpu as pltpu


# ----------------------------- Pallas kernel --------------------------------
def _mlp_kernel(x1_ref, x2_ref, w1_ref, b1_ref, w2_ref, b2_ref, w3_ref, b3_ref,
                out_ref):
    """Feature-major MLP: activations are (features, batch) so batch maps to lanes.
    Weights are torch-native (out, in); each layer is y = W @ x + b."""
    cd = w1_ref.dtype  # matmul-operand dtype (bf16 fast path or f32)

    # Fused concat along the contraction (sublane) axis: [x1; x2] -> (ob_dim, BT).
    # One K=ob_dim matmul for layer 1 instead of two K=d matmuls.
    x = jnp.concatenate([x1_ref[...], x2_ref[...]], axis=0).astype(cd)

    # Layer 1: (size, ob_dim) @ (ob_dim, BT) -> (size, BT); bias (size,1) broadcasts
    # over the lane (batch) axis.  Accumulate in f32; bias/tanh in f32 (v5e-safe).
    h = jnp.dot(w1_ref[...], x, preferred_element_type=jnp.float32)
    h = jnp.tanh(h + b1_ref[...])

    # Layer 2: Linear + Tanh.
    h = jnp.dot(w2_ref[...], h.astype(cd), preferred_element_type=jnp.float32)
    h = jnp.tanh(h + b2_ref[...])

    # Output layer: Linear (Identity activation).  Lane-dense (ac_dim, BT) store.
    out = jnp.dot(w3_ref[...], h.astype(cd), preferred_element_type=jnp.float32)
    out_ref[...] = (out + b3_ref[...]).astype(out_ref.dtype)


def mean_net_pallas(x1t, x2t, kparams, *, batch_tile=None):
    """Run build_mlp(ob_dim, ac_dim, n_layers=2, size) on the (implicitly
    concatenated) feature-major inputs via a single Pallas TPU kernel.

    x1t, x2t: (d1, B), (d2, B) feature-major activations (batch on lanes).
    kparams : kernel-ready params from prepare_kernel_params()
              (w1 (size,ob_dim), b1 (size,1), w2 (size,size), b2 (size,1),
               w3 (ac_dim,size), b3 (ac_dim,1)); weights possibly bf16, biases f32.
    Returns (ac_dim, B); caller transposes back.
    """
    d1, B = x1t.shape
    d2, B2 = x2t.shape
    assert B == B2, "inputs must share the batch dimension"
    w1, b1, w2, b2, w3, b3 = kparams
    size, ob_dim = w1.shape
    assert ob_dim == d1 + d2, "W1 columns must match concatenated feature dim"
    ac_dim = w3.shape[0]

    # Batch (lane-axis) tiling: default is a single tile — this kernel is
    # overhead-bound at small/medium batches, so extra grid steps only add the
    # ~0.35us/step fixed cost.  For very large B pass batch_tile (multiple of 128).
    BT = B if batch_tile is None else batch_tile
    assert B % BT == 0, "batch must be divisible by batch_tile"
    assert BT == B or BT % 128 == 0, "batch_tile must be a multiple of 128 (lanes)"
    grid = (B // BT,)
    # Single-tile: nothing to shard.  Multi-tile: batch tiles are independent.
    dim_sem = ("parallel",) if grid[0] > 1 else ("arbitrary",)

    # Weights/biases: whole-array VMEM residents — DMA'd once, never re-fetched,
    # no double-buffer allocation.  Total residency is a few tens of KiB, far
    # under every generation's scoped-VMEM default.
    weight_spec = pl.BlockSpec(memory_space=pltpu.MemorySpace.VMEM)

    itemsize = x1t.dtype.itemsize
    flops = 2 * B * (ob_dim * size + size * size + size * ac_dim)
    transcendentals = 2 * B * size  # two tanh layers
    bytes_accessed = (
        (x1t.size + x2t.size + B * ac_dim) * itemsize
        + sum(int(p.size) * p.dtype.itemsize for p in kparams)
    )

    return pl.pallas_call(
        _mlp_kernel,
        out_shape=jax.ShapeDtypeStruct((ac_dim, B), x1t.dtype),
        grid=grid,
        in_specs=[
            pl.BlockSpec((d1, BT), lambda i: (0, i)),   # x1^T tile (batch on lanes)
            pl.BlockSpec((d2, BT), lambda i: (0, i)),   # x2^T tile
            weight_spec,                                # W1 (size, ob_dim)
            weight_spec,                                # b1 (size, 1)
            weight_spec,                                # W2 (size, size)
            weight_spec,                                # b2 (size, 1)
            weight_spec,                                # W3 (ac_dim, size)
            weight_spec,                                # b3 (ac_dim, 1)
        ],
        # Lane-dense output: last dim is the batch (full or a multiple of 128),
        # so stores are unmasked full-lane vst instead of width-ac_dim vst.msk.
        out_specs=pl.BlockSpec((ac_dim, BT), lambda i: (0, i)),
        compiler_params=pltpu.CompilerParams(dimension_semantics=dim_sem),
        cost_estimate=pl.CostEstimate(
            flops=flops,
            transcendentals=transcendentals,
            bytes_accessed=bytes_accessed),
    )(x1t, x2t, w1, b1, w2, b2, w3, b3)


# ------------------------------ ConcatMLP -----------------------------------
def prepare_kernel_params(params, *, use_bf16=True):
    """Hoisted (once-per-init) weight prep: cast matmul operands to bf16 for the
    MXU fast path.  Biases stay f32 so the VPU/EUP path is v5e-safe.  Weights are
    already torch-native (out, in); no transpose needed."""
    w1, b1, w2, b2, w3, b3 = params
    mm = jnp.bfloat16 if use_bf16 else w1.dtype
    return (w1.astype(mm), b1, w2.astype(mm), b2, w3.astype(mm), b3)


def concat_mlp_forward(inputs, kparams, logstd, *, dim=1, batch_tile=None):
    """ConcatMLP.forward: (implicit) concat of inputs along dim=1, run mean_net,
    build MultivariateNormal parameters (batch_mean, batch_scale_tril)."""
    assert dim == 1 and len(inputs) == 2, \
        "fused kernel handles exactly 2 inputs concatenated on dim=1"
    x1, x2 = inputs
    # Tiny transposes in the wrapper put batch on the lane axis for the kernel.
    mean_t = mean_net_pallas(x1.T, x2.T, kparams, batch_tile=batch_tile)  # (ac_dim, B)
    batch_mean = mean_t.T                                                 # (B, ac_dim)
    scale_tril = jnp.diag(jnp.exp(logstd))                                # glue
    batch_dim = batch_mean.shape[0]
    batch_scale_tril = jnp.broadcast_to(
        scale_tril, (batch_dim,) + scale_tril.shape)                      # .repeat(batch,1,1)
    return batch_mean, batch_scale_tril


def init_params(key, ob_dim, ac_dim, n_layers, size, dtype=jnp.float32):
    """Deterministic synthetic init of mean_net (n_layers=2 hidden + output).
    Weights are stored torch-native (out, in); biases as (out, 1) columns so they
    broadcast over the lane (batch) axis inside the kernel."""
    assert n_layers == 2, "this script hardcodes n_layers=2 in the kernel"
    k1, k2, k3 = jax.random.split(key, 3)
    w1 = jax.random.normal(k1, (size, ob_dim), dtype) * 0.1
    b1 = jnp.zeros((size, 1), dtype)
    w2 = jax.random.normal(k2, (size, size), dtype) * 0.1
    b2 = jnp.zeros((size, 1), dtype)
    w3 = jax.random.normal(k3, (ac_dim, size), dtype) * 0.1
    b3 = jnp.zeros((ac_dim, 1), dtype)
    logstd = jnp.zeros((ac_dim,), dtype)   # nn.Parameter(torch.zeros(ac_dim))
    return (w1, b1, w2, b2, w3, b3), logstd


# -------------------------------- main ---------------------------------------
if __name__ == "__main__":
    # Two inputs (e.g. obs + goal) concatenated on dim=1 -> ob_dim = 8 + 8 = 16.
    batch, d1, d2 = 256, 8, 8
    ob_dim, ac_dim, n_layers, size = d1 + d2, 4, 2, 64

    key = jax.random.PRNGKey(0)
    kx1, kx2, kp = jax.random.split(key, 3)
    x1 = jax.random.normal(kx1, (batch, d1), jnp.float32)
    x2 = jax.random.normal(kx2, (batch, d2), jnp.float32)
    params, logstd = init_params(kp, ob_dim, ac_dim, n_layers, size)

    # Weight prep is done ONCE here, not per forward call.
    kparams_bf16 = prepare_kernel_params(params, use_bf16=True)
    kparams_f32 = prepare_kernel_params(params, use_bf16=False)

    # batch_tile=None -> single tile (grid=(1,)): at B=256 the kernel is purely
    # overhead-bound, so splitting the batch only adds per-step cost.
    batch_mean, batch_scale_tril = concat_mlp_forward(
        (x1, x2), kparams_bf16, logstd, dim=1, batch_tile=None)
    jax.block_until_ready(batch_mean)
    jax.block_until_ready(batch_scale_tril)

    # f32 path for a tight numerical check.
    batch_mean_f32, _ = concat_mlp_forward(
        (x1, x2), kparams_f32, logstd, dim=1, batch_tile=None)
    jax.block_until_ready(batch_mean_f32)

    # Pure-JAX f32 reference (explicit concat; weights are torch (out, in)).
    w1, b1, w2, b2, w3, b3 = params
    x = jnp.concatenate((x1, x2), axis=1)
    ref = jnp.tanh(x @ w1.T + b1.T)
    ref = jnp.tanh(ref @ w2.T + b2.T)
    ref = ref @ w3.T + b3.T

    assert batch_mean.shape == (batch, ac_dim)
    assert batch_scale_tril.shape == (batch, ac_dim, ac_dim)
    assert jnp.allclose(batch_mean_f32, ref, atol=1e-4, rtol=1e-4), "f32 path mismatch"
    assert jnp.allclose(batch_mean, ref, atol=2e-2, rtol=2e-2), "bf16 path mismatch"
    assert jnp.allclose(batch_scale_tril[0], jnp.diag(jnp.exp(logstd)))

    print("KERNEL_OK")
</pallas_src>

<mosaic_0001>
module attributes {stable_mosaic.version = 11 : i64} {
  func.func @_mlp_kernel(%arg0: i32, %arg1: memref<8x256xf32, #tpu.memory_space<vmem>>, %arg2: memref<8x256xf32, #tpu.memory_space<vmem>>, %arg3: memref<64x16xbf16, #tpu.memory_space<vmem>>, %arg4: memref<64x1xf32, #tpu.memory_space<vmem>>, %arg5: memref<64x64xbf16, #tpu.memory_space<vmem>>, %arg6: memref<64x1xf32, #tpu.memory_space<vmem>>, %arg7: memref<4x64xbf16, #tpu.memory_space<vmem>>, %arg8: memref<4x1xf32, #tpu.memory_space<vmem>>, %arg9: memref<4x256xf32, #tpu.memory_space<vmem>>) attributes {dimension_semantics = [#tpu.dimension_semantics<arbitrary>], iteration_bounds = array<i64: 1>, scalar_prefetch = 0 : i64, scratch_operands = 0 : i64, tpu.core_type = #tpu.core_type<tc>, window_params = [{transform_indices = @transform_0, window_bounds = array<i64: 8, 256>}, {transform_indices = @transform_1, window_bounds = array<i64: 8, 256>}, {pipeline_mode = #tpu.pipeline_mode<synchronous>, transform_indices = @transform_2, window_bounds = array<i64: 64, 16>}, {pipeline_mode = #tpu.pipeline_mode<synchronous>, transform_indices = @transform_3, window_bounds = array<i64: 64, 1>}, {pipeline_mode = #tpu.pipeline_mode<synchronous>, transform_indices = @transform_4, window_bounds = array<i64: 64, 64>}, {pipeline_mode = #tpu.pipeline_mode<synchronous>, transform_indices = @transform_5, window_bounds = array<i64: 64, 1>}, {pipeline_mode = #tpu.pipeline_mode<synchronous>, transform_indices = @transform_6, window_bounds = array<i64: 4, 64>}, {pipeline_mode = #tpu.pipeline_mode<synchronous>, transform_indices = @transform_7, window_bounds = array<i64: 4, 1>}, {transform_indices = @transform_8, window_bounds = array<i64: 4, 256>}]} {
    %c0 = arith.constant 0 : index
    %c0_0 = arith.constant 0 : index
    %0 = vector.load %arg1[%c0, %c0_0] : memref<8x256xf32, #tpu.memory_space<vmem>>, vector<8x256xf32>
    %c0_1 = arith.constant 0 : index
    %c0_2 = arith.constant 0 : index
    %1 = vector.load %arg2[%c0_1, %c0_2] : memref<8x256xf32, #tpu.memory_space<vmem>>, vector<8x256xf32>
    %2 = tpu.concatenate %0, %1 in 0 : vector<8x256xf32>, vector<8x256xf32> -> vector<16x256xf32>
    %3 = arith.truncf %2 : vector<16x256xf32> to vector<16x256xbf16>
    %c0_3 = arith.constant 0 : index
    %c0_4 = arith.constant 0 : index
    %4 = vector.load %arg3[%c0_3, %c0_4] : memref<64x16xbf16, #tpu.memory_space<vmem>>, vector<64x16xbf16>
    %cst = arith.constant dense<0.000000e+00> : vector<64x256xf32>
    %5 = tpu.matmul %4, %3, %cst {dimension_numbers = #tpu.dot_dimension_numbers<[1], [0], [0], [1], [0, 0, 1, 1], [], []>} : vector<64x16xbf16>, vector<16x256xbf16>, vector<64x256xf32> -> vector<64x256xf32>
    %c0_5 = arith.constant 0 : index
    %c0_6 = arith.constant 0 : index
    %6 = vector.load %arg4[%c0_5, %c0_6] : memref<64x1xf32, #tpu.memory_space<vmem>>, vector<64x1xf32>
    %7 = vector.broadcast %6 : vector<64x1xf32> to vector<64x256xf32>
    %8 = arith.addf %5, %7 : vector<64x256xf32>
    %9 = math.tanh %8 : vector<64x256xf32>
    %c0_7 = arith.constant 0 : index
    %c0_8 = arith.constant 0 : index
    %10 = vector.load %arg5[%c0_7, %c0_8] : memref<64x64xbf16, #tpu.memory_space<vmem>>, vector<64x64xbf16>
    %11 = arith.truncf %9 : vector<64x256xf32> to vector<64x256xbf16>
    %cst_9 = arith.constant dense<0.000000e+00> : vector<64x256xf32>
    %12 = tpu.matmul %10, %11, %cst_9 {dimension_numbers = #tpu.dot_dimension_numbers<[1], [0], [0], [1], [0, 0, 1, 1], [], []>} : vector<64x64xbf16>, vector<64x256xbf16>, vector<64x256xf32> -> vector<64x256xf32>
    %c0_10 = arith.constant 0 : index
    %c0_11 = arith.constant 0 : index
    %13 = vector.load %arg6[%c0_10, %c0_11] : memref<64x1xf32, #tpu.memory_space<vmem>>, vector<64x1xf32>
    %14 = vector.broadcast %13 : vector<64x1xf32> to vector<64x256xf32>
    %15 = arith.addf %12, %14 : vector<64x256xf32>
    %16 = math.tanh %15 : vector<64x256xf32>
    %c0_12 = arith.constant 0 : index
    %c0_13 = arith.constant 0 : index
    %17 = vector.load %arg7[%c0_12, %c0_13] : memref<4x64xbf16, #tpu.memory_space<vmem>>, vector<4x64xbf16>
    %18 = arith.truncf %16 : vector<64x256xf32> to vector<64x256xbf16>
    %cst_14 = arith.constant dense<0.000000e+00> : vector<4x256xf32>
    %19 = tpu.matmul %17, %18, %cst_14 {dimension_numbers = #tpu.dot_dimension_numbers<[1], [0], [0], [1], [0, 0, 1, 1], [], []>} : vector<4x64xbf16>, vector<64x256xbf16>, vector<4x256xf32> -> vector<4x256xf32>
    %c0_15 = arith.constant 0 : index
    %c0_16 = arith.constant 0 : index
    %20 = vector.load %arg8[%c0_15, %c0_16] : memref<4x1xf32, #tpu.memory_space<vmem>>, vector<4x1xf32>
    %21 = vector.broadcast %20 : vector<4x1xf32> to vector<4x256xf32>
    %22 = arith.addf %19, %21 : vector<4x256xf32>
    %c0_17 = arith.constant 0 : index
    %c0_18 = arith.constant 0 : index
    %23 = vector.load %arg9[%c0_17, %c0_18] : memref<4x256xf32, #tpu.memory_space<vmem>>, vector<4x256xf32>
    tpu.vector_store %arg9[%c0_17, %c0_18], %22 {strides = array<i32>} : memref<4x256xf32, #tpu.memory_space<vmem>>, vector<4x256xf32>,
    return
  }
  func.func @transform_0(%arg0: i32) -> (i32, i32) {
    %c0_i32 = arith.constant 0 : i32
    %c0_i32_0 = arith.constant 0 : i32
    return %c0_i32, %arg0 : i32, i32
  }
  func.func @transform_1(%arg0: i32) -> (i32, i32) {
    %c0_i32 = arith.constant 0 : i32
    %c0_i32_0 = arith.constant 0 : i32
    return %c0_i32, %arg0 : i32, i32
  }
  func.func @transform_2(%arg0: i32) -> (i32, i32) {
    %c0_i32 = arith.constant 0 : i32
    %c0_i32_0 = arith.constant 0 : i32
    %c0_i32_1 = arith.constant 0 : i32
    return %c0_i32, %c0_i32_0 : i32, i32
  }
  func.func @transform_3(%arg0: i32) -> (i32, i32) {
    %c0_i32 = arith.constant 0 : i32
    %c0_i32_0 = arith.constant 0 : i32
    %c0_i32_1 = arith.constant 0 : i32
    return %c0_i32, %c0_i32_0 : i32, i32
  }
  func.func @transform_4(%arg0: i32) -> (i32, i32) {
    %c0_i32 = arith.constant 0 : i32
    %c0_i32_0 = arith.constant 0 : i32
    %c0_i32_1 = arith.constant 0 : i32
    return %c0_i32, %c0_i32_0 : i32, i32
  }
  func.func @transform_5(%arg0: i32) -> (i32, i32) {
    %c0_i32 = arith.constant 0 : i32
    %c0_i32_0 = arith.constant 0 : i32
    %c0_i32_1 = arith.constant 0 : i32
    return %c0_i32, %c0_i32_0 : i32, i32
  }
  func.func @transform_6(%arg0: i32) -> (i32, i32) {
    %c0_i32 = arith.constant 0 : i32
    %c0_i32_0 = arith.constant 0 : i32
    %c0_i32_1 = arith.constant 0 : i32
    return %c0_i32, %c0_i32_0 : i32, i32
  }
  func.func @transform_7(%arg0: i32) -> (i32, i32) {
    %c0_i32 = arith.constant 0 : i32
    %c0_i32_0 = arith.constant 0 : i32
    %c0_i32_1 = arith.constant 0 : i32
    return %c0_i32, %c0_i32_0 : i32, i32
  }
  func.func @transform_8(%arg0: i32) -> (i32, i32) {
    %c0_i32 = arith.constant 0 : i32
    %c0_i32_0 = arith.constant 0 : i32
    return %c0_i32, %arg0 : i32, i32
  }
}

</mosaic_0001>

<bundles_post_ra>
// kernel: tpu_custom_call.1
= control target key start
LH: loop header
LB: loop body
LE: loop exit
PB: predicated region body
PF: predicated region fallthrough
CT: control target
= control target key end

     0   :  { %v596_v5 = vmov 0   ;;  %vm113_vm0 = vcmask 130048   ;;  %s765_s0 = inlined_call_operand.vmem [shape: f32[8,256], index: 0, kind: input, shape index: {}]   ;;  %s766_s1 = inlined_call_operand.vmem [shape: f32[8,256], index: 1, kind: input, shape index: {}]   ;;  %s767_s2 = inlined_call_operand.vmem [shape: bf16[64,16], index: 2, kind: input, shape index: {}]   ;;  %s768_s3 = inlined_call_operand.vmem [shape: f32[64,1], index: 3, kind: input, shape index: {}]   ;;  %s769_s4 = inlined_call_operand.vmem [shape: bf16[64,64], index: 4, kind: input, shape index: {}]   ;;  %s770_s5 = inlined_call_operand.vmem [shape: f32[64,1], index: 5, kind: input, shape index: {}]   ;;  %s771_s6 = inlined_call_operand.vmem [shape: bf16[4,64], index: 6, kind: input, shape index: {}]   ;;  %s772_s7 = inlined_call_operand.vmem [shape: f32[4,1], index: 7, kind: input, shape index: {}]   ;;  %s773_s8 = inlined_call_operand.hbm [shape: f32[4,256], index: 8, kind: output, shape index: {}]  }
   0x1   :  { %v32_v0 = vld [vmem:[%s765_s0 + $0x8] sm:$0xff]  ;;  %v31_v2 = vld [vmem:[%s765_s0] sm:$0xff]  ;;  %158 = vmatprep.mubr.bf16.mxu0 %v596_v5  ;;  %498 = vset.pattern.permute.xlu0 %v596_v5  ;;  %v47_v9 = vld [vmem:[%s768_s3 + $0x10] sm:$0xff] }
   0x2   :  { %v34_v1 = vld [vmem:[%s766_s1 + $0x8] sm:$0xff]  ;;  %v33_v4 = vld [vmem:[%s766_s1] sm:$0xff]  ;;  %499 = vset.pattern.permute.xlu1 %v596_v5  ;;  %344 = vmatprep.mubr.bf16.mxu1 %v596_v5  ;;  %v48_v11 = vld [vmem:[%s768_s3 + $0x18] sm:$0xff] }
   0x3   :  { %v36_v3 = vpack.c.bf16 %v34_v1, %v32_v0  ;;  %v35_v6 = vpack.c.bf16 %v33_v4, %v31_v2  ;;  %v500_v7 = vld [vmem:[%s767_s2] sm:$0xff]   ;;  %v46_v10 = vld [vmem:[%s768_s3 + $0x8] sm:$0xff]  ;;  %65 = vperm.xlu1 %499, %v47_v9  }
   0x4   :  { %v45_v8 = vld [vmem:[%s768_s3] sm:$0xff]  ;;  %v501_v12 = vld [vmem:[%s767_s2 + $0x8] sm:$0xff]  }
   0x5   :  { %126 = vmatprep.subr.bf16.mxu0 %v36_v3  ;;  %55 = vperm.xlu0 %498, %v45_v8   ;;  %v49_v13 = vld [vmem:[%s768_s3 + $0x20] sm:$0xff]  ;;  %v50_v14 = vld [vmem:[%s768_s3 + $0x28] sm:$0xff] }
   0x6   :  { %127 = vmatpush1.bf16.msra.mxu0 %v35_v6 }
   0x7   :  { %70 = vperm.xlu1 %499, %v48_v11  }
   0x9   :  { %483 = vmatmul.mubr.msk.bf16.vlgmr.msra.gmra.mrb[0].mxu0 %vm113_vm0, %v500_v7  ;;  %60 = vperm.xlu0 %498, %v46_v10  }
   0xa   :  { %168 = vmatprep.mubr.bf16.mxu0 %v596_v5 }
   0xb   :  { %13 = vsyncpa [#allocation3], 0  ;;  %v51_v15 = vld [vmem:[%s768_s3 + $0x30] sm:$0xff]  ;;  %80 = vperm.xlu1 %499, %v50_v14   ;;  %v52_v16 = vld [vmem:[%s768_s3 + $0x38] sm:$0xff]  ;;  %vm299_vm1 = vcmask 523264   ;;  %s597_s12 = smov [#allocation2]  }
   0xc   :  { %v502_v17 = vld [vmem:[%s767_s2 + $0x10] sm:$0xff]   ;;  %v231_v18 = vld [vmem:[%s770_s5] sm:$0xff]  ;;  %v232_v19 = vld [vmem:[%s770_s5 + $0x8] sm:$0xff]  ;;  %s471_s13 = sshll.u32 %s597_s12, 4  ;;  %s472_s13 = int_to_ptr.vmem [resolvable:$true] %s471_s13 }
   0xd   :  { %75 = vperm.xlu0 %498, %v49_v13   ;;  %v233_v20 = vld [vmem:[%s770_s5 + $0x10] sm:$0xff]  ;;  %v234_v21 = vld [vmem:[%s770_s5 + $0x18] sm:$0xff]  ;;  %v235_v23 = vld [vmem:[%s770_s5 + $0x20] sm:$0xff]  ;;  %s572_s14 = scalar_lea.vmem %s472_s13, 128  ;;  %p577_p1 = scmp.lt.s32.totalorder %s472_s13, %s472_s13 }
   0xe   :  { %v503_v22 = vld [vmem:[%s767_s2 + $0x18] sm:$0xff]   ;;  %v236_v24 = vld [vmem:[%s770_s5 + $0x28] sm:$0xff]  ;;  %v237_v25 = vld [vmem:[%s770_s5 + $0x30] sm:$0xff]  ;;  %p573_p0 = scmp.ne.s32.totalorder %s472_s13, %s572_s14  ;;  %p578_p2 = scmp.lt.s32.totalorder %s572_s14, %s572_s14 }
   0xf   :  { %90 = vperm.xlu1 %499, %v52_v16   ;;  %v238_v26 = vld [vmem:[%s770_s5 + $0x38] sm:$0xff]  ;;  %v410_v27 = vld [vmem:[%s772_s7] sm:$0xf] }
  0x10   :  { %p579_p3 = por %p578_p2, %p577_p1 }
  0x11   :  { %484 = vmatmul.mubr.msk.bf16.gmra.mrb[4].mxu0 %vm113_vm0, %v501_v12  ;;  %85 = vperm.xlu0 %498, %v51_v15  }
  0x12   :  { %178 = vmatprep.mubr.bf16.mxu0 %v596_v5  ;;  %p580_p4 = pnand %p579_p3, %p573_p0 }
  0x13   :  { %246 = vperm.xlu1 %499, %v232_v19  }
  0x15   :  { %241 = vperm.xlu0 %498, %v231_v18  }
  0x17   :  { %256 = vperm.xlu1 %499, %v234_v21  }
  0x19   :  { %485 = vmatmul.mubr.msk.bf16.gmra.mrb[8].mxu0 %vm113_vm0, %v502_v17  ;;  %251 = vperm.xlu0 %498, %v233_v20  }
  0x1a   :  { %188 = vmatprep.mubr.bf16.mxu0 %v596_v5 }
  0x1b   :  { %266 = vperm.xlu1 %499, %v236_v24  }
  0x1d   :  { %261 = vperm.xlu0 %498, %v235_v23  }
  0x1f   :  { %276 = vperm.xlu1 %499, %v238_v26  }
  0x21   :  { %486 = vmatmul.mubr.msk.bf16.gmra.mrb[12].mxu0 %vm113_vm0, %v503_v22  ;;  %271 = vperm.xlu0 %498, %v237_v25  }
  0x22   :  { %451 = vmatprep.mubr.bf16.mxu0 %v596_v5 }
  0x25   :  { %413 = vperm.xlu0 %498, %v410_v27  }
  0x82   :  { %v66_v37 = vpop.permute.xlu1 %65 }
  0x84   :  { %v56_v28 = vpop.permute.xlu0 %55 }
  0x86   :  { %v71_v42 = vpop.permute.xlu1 %70 }
  0x88   :  { %v61_v32 = vpop.permute.xlu0 %60 }
  0x8a   :  { %v81_v58 = vpop.permute.xlu1 %80 }
  0x8c   :  { %v76_v52 = vpop.permute.xlu0 %75 }
  0x8e   :  { %v91_v11 = vpop.permute.xlu1 %90 }
  0x90   :  { %v86_v4 = vpop.permute.xlu0 %85 }
  0xdc   :  { %v160_v29 = vpop.f32.mrb[0].mxu0 }
  0xdd   :  { %v161_v30 = vadd.f32 %v160_v29, %v56_v28  ;;  %v162_v31 = vpop.f32.mrb[1].mxu0  ;;  %v504_v29 = vld [vmem:[%s769_s4] sm:$0xff]  }
  0xde   :  { %v163_v33 = vadd.f32 %v162_v31, %v56_v28  ;;  %v164_v34 = vpop.f32.mrb[2].mxu0  ;;  %v506_v31 = vld [vmem:[%s769_s4 + $0x10] sm:$0xff]  }
  0xdf   :  { %508 = vtanh.f32 %v161_v30  ;;  %v165_v35 = vadd.f32 %v164_v34, %v61_v32  ;;  %v166_v36 = vpop.f32.mrb[3].mxu0  ;;  %v505_v30 = vld [vmem:[%s769_s4 + $0x8] sm:$0xff]  }
  0xe0   :  { %510 = vtanh.f32 %v163_v33  ;;  %v167_v38 = vadd.f32 %v166_v36, %v61_v32  ;;  %v507_v32 = vld [vmem:[%s769_s4 + $0x18] sm:$0xff]   ;;  %v242_v33 = vpop.permute.xlu0 %241 }
  0xe1   :  { %512 = vtanh.f32 %v165_v35 }
  0xe2   :  { %514 = vtanh.f32 %v167_v38 }
  0xe4   :  { %v170_v39 = vpop.f32.mrb[4].mxu0 }
  0xe5   :  { %v171_v40 = vadd.f32 %v170_v39, %v66_v37  ;;  %v172_v41 = vpop.f32.mrb[5].mxu0 }
  0xe6   :  { %v173_v43 = vadd.f32 %v172_v41, %v66_v37  ;;  %v174_v44 = vpop.f32.mrb[6].mxu0  ;;  %v247_v37 = vpop.permute.xlu1 %246 }
  0xe7   :  { %516 = vtanh.f32 %v171_v40  ;;  %v175_v45 = vadd.f32 %v174_v44, %v71_v42  ;;  %v176_v46 = vpop.f32.mrb[7].mxu0 }
  0xe8   :  { %518 = vtanh.f32 %v173_v43  ;;  %v177_v47 = vadd.f32 %v176_v46, %v71_v42 }
  0xe9   :  { %v509_v48 = vpop.eup %508  ;;  %520 = vtanh.f32 %v175_v45 }
  0xea   :  { %v511_v49 = vpop.eup %510  ;;  %522 = vtanh.f32 %v177_v47  ;;  %v257_v46 = vpop.permute.xlu1 %256 }
  0xeb   :  { %v513_v50 = vpop.eup %512 }
  0xec   :  { %v515_v51 = vpop.eup %514  ;;  %v180_v53 = vpop.f32.mrb[8].mxu0  ;;  %v223_v54 = vpack.c.bf16 %v513_v50, %v509_v48 }
  0xed   :  { %v181_v55 = vadd.f32 %v180_v53, %v76_v52  ;;  %v182_v56 = vpop.f32.mrb[9].mxu0  ;;  %v224_v57 = vpack.c.bf16 %v515_v51, %v511_v49 }
  0xee   :  { %v183_v59 = vadd.f32 %v182_v56, %v76_v52  ;;  %v184_v60 = vpop.f32.mrb[10].mxu0 }
  0xef   :  { %524 = vtanh.f32 %v181_v55  ;;  %v185_v61 = vadd.f32 %v184_v60, %v81_v58  ;;  %v186_v62 = vpop.f32.mrb[11].mxu0  ;;  %312 = vmatprep.subr.bf16.mxu1 %v224_v57 }
  0xf0   :  { %526 = vtanh.f32 %v183_v59  ;;  %v187_v63 = vadd.f32 %v186_v62, %v81_v58  ;;  %313 = vmatpush1.bf16.msra.mxu1 %v223_v54  ;;  %v267_v62 = vpop.permute.xlu1 %266 }
  0xf1   :  { %v517_v0 = vpop.eup %516  ;;  %528 = vtanh.f32 %v185_v61 }
  0xf2   :  { %v519_v1 = vpop.eup %518  ;;  %530 = vtanh.f32 %v187_v63 }
  0xf3   :  { %v521_v2 = vpop.eup %520 }
  0xf4   :  { %v523_v3 = vpop.eup %522  ;;  %v190_v6 = vpop.f32.mrb[12].mxu0  ;;  %v225_v7 = vpack.c.bf16 %v521_v2, %v517_v0 }
  0xf5   :  { %v191_v8 = vadd.f32 %v190_v6, %v86_v4  ;;  %v192_v9 = vpop.f32.mrb[13].mxu0  ;;  %v226_v10 = vpack.c.bf16 %v523_v3, %v519_v1 }
  0xf6   :  { %v193_v12 = vadd.f32 %v192_v9, %v86_v4  ;;  %v194_v13 = vpop.f32.mrb[14].mxu0 }
  0xf7   :  { %532 = vtanh.f32 %v191_v8  ;;  %v195_v14 = vadd.f32 %v194_v13, %v91_v11  ;;  %v196_v15 = vpop.f32.mrb[15].mxu0  ;;  %314 = vmatprep.subr.bf16.mxu1 %v226_v10 }
  0xf8   :  { %534 = vtanh.f32 %v193_v12  ;;  %v197_v16 = vadd.f32 %v196_v15, %v91_v11  ;;  %315 = vmatpush1.bf16.msra.mxu1 %v225_v7  ;;  %v277_v15 = vpop.permute.xlu1 %276 }
  0xf9   :  { %v525_v17 = vpop.eup %524  ;;  %536 = vtanh.f32 %v195_v14 }
  0xfa   :  { %v527_v18 = vpop.eup %526  ;;  %538 = vtanh.f32 %v197_v16 }
  0xfb   :  { %v529_v19 = vpop.eup %528 }
  0xfc   :  { %v531_v20 = vpop.eup %530  ;;  %v227_v21 = vpack.c.bf16 %v529_v19, %v525_v17 }
  0xfd   :  { %v228_v22 = vpack.c.bf16 %v531_v20, %v527_v18 }
  0xff   :  { %316 = vmatprep.subr.bf16.mxu1 %v228_v22 }
 0x100   :  { %317 = vmatpush1.bf16.msra.mxu1 %v227_v21 }
 0x101   :  { %v533_v23 = vpop.eup %532 }
 0x102   :  { %v535_v24 = vpop.eup %534 }
 0x103   :  { %v537_v25 = vpop.eup %536 }
 0x104   :  { %v539_v26 = vpop.eup %538  ;;  %v229_v27 = vpack.c.bf16 %v537_v25, %v533_v23 }
 0x105   :  { %v230_v28 = vpack.c.bf16 %v539_v26, %v535_v24 }
 0x107   :  { %318 = vmatprep.subr.bf16.mxu1 %v230_v28 }
 0x108   :  { %319 = vmatpush1.bf16.msra.mxu1 %v229_v27 }
 0x10b   :  { %491 = vmatmul.mubr.msk.bf16.vlgmr.msra.gmra.mrb[0].mxu1 %vm299_vm1, %v504_v29 }
 0x10c   :  { %354 = vmatprep.mubr.bf16.mxu1 %v596_v5 }
 0x113   :  { %492 = vmatmul.mubr.msk.bf16.gmra.mrb[4].mxu1 %vm299_vm1, %v505_v30 }
 0x114   :  { %364 = vmatprep.mubr.bf16.mxu1 %v596_v5 }
 0x11b   :  { %493 = vmatmul.mubr.msk.bf16.gmra.mrb[8].mxu1 %vm299_vm1, %v506_v31 }
 0x11c   :  { %374 = vmatprep.mubr.bf16.mxu1 %v596_v5  ;;  %v252_v5 = vpop.permute.xlu0 %251 }
 0x120   :  { %v262_v56 = vpop.permute.xlu0 %261 }
 0x123   :  { %494 = vmatmul.mubr.msk.bf16.gmra.mrb[12].mxu1 %vm299_vm1, %v507_v32 }
 0x124   :  { %v272_v9 = vpop.permute.xlu0 %271 }
 0x1de   :  { %v346_v34 = vpop.f32.mrb[0].mxu1 }
 0x1df   :  { %v347_v35 = vadd.f32 %v346_v34, %v242_v33  ;;  %v348_v36 = vpop.f32.mrb[1].mxu1  ;;  %v414_v34 = vpop.permute.xlu0 %413 }
 0x1e0   :  { %v349_v38 = vadd.f32 %v348_v36, %v242_v33  ;;  %v350_v39 = vpop.f32.mrb[2].mxu1  ;;  %v401_v33 = vld [vmem:[%s771_s6] sm:$0x3] }
 0x1e1   :  { %540 = vtanh.f32 %v347_v35  ;;  %v351_v40 = vadd.f32 %v350_v39, %v247_v37  ;;  %v352_v41 = vpop.f32.mrb[3].mxu1 }
 0x1e2   :  { %542 = vtanh.f32 %v349_v38  ;;  %v353_v42 = vadd.f32 %v352_v41, %v247_v37 }
 0x1e3   :  { %544 = vtanh.f32 %v351_v40 }
 0x1e4   :  { %546 = vtanh.f32 %v353_v42 }
 0x1e6   :  { %v356_v43 = vpop.f32.mrb[4].mxu1 }
 0x1e7   :  { %v357_v44 = vadd.f32 %v356_v43, %v252_v5  ;;  %v358_v45 = vpop.f32.mrb[5].mxu1 }
 0x1e8   :  { %v359_v47 = vadd.f32 %v358_v45, %v252_v5  ;;  %v360_v48 = vpop.f32.mrb[6].mxu1 }
 0x1e9   :  { %548 = vtanh.f32 %v357_v44  ;;  %v361_v49 = vadd.f32 %v360_v48, %v257_v46  ;;  %v362_v50 = vpop.f32.mrb[7].mxu1 }
 0x1ea   :  { %550 = vtanh.f32 %v359_v47  ;;  %v363_v51 = vadd.f32 %v362_v50, %v257_v46 }
 0x1eb   :  { %v541_v52 = vpop.eup %540  ;;  %552 = vtanh.f32 %v361_v49 }
 0x1ec   :  { %v543_v53 = vpop.eup %542  ;;  %554 = vtanh.f32 %v363_v51 }
 0x1ed   :  { %v545_v54 = vpop.eup %544 }
 0x1ee   :  { %v547_v55 = vpop.eup %546  ;;  %v366_v57 = vpop.f32.mrb[8].mxu1  ;;  %v402_v58 = vpack.c.bf16 %v545_v54, %v541_v52 }
 0x1ef   :  { %v367_v59 = vadd.f32 %v366_v57, %v262_v56  ;;  %v368_v60 = vpop.f32.mrb[9].mxu1  ;;  %v403_v61 = vpack.c.bf16 %v547_v55, %v543_v53 }
 0x1f0   :  { %v369_v63 = vadd.f32 %v368_v60, %v262_v56  ;;  %v370_v0 = vpop.f32.mrb[10].mxu1 }
 0x1f1   :  { %556 = vtanh.f32 %v367_v59  ;;  %v371_v1 = vadd.f32 %v370_v0, %v267_v62  ;;  %v372_v2 = vpop.f32.mrb[11].mxu1  ;;  %419 = vmatprep.subr.bf16.mxu0 %v403_v61 }
 0x1f2   :  { %558 = vtanh.f32 %v369_v63  ;;  %v373_v3 = vadd.f32 %v372_v2, %v267_v62  ;;  %420 = vmatpush1.bf16.msra.mxu0 %v402_v58 }
 0x1f3   :  { %v549_v4 = vpop.eup %548  ;;  %560 = vtanh.f32 %v371_v1 }
 0x1f4   :  { %v551_v6 = vpop.eup %550  ;;  %562 = vtanh.f32 %v373_v3 }
 0x1f5   :  { %v553_v7 = vpop.eup %552 }
 0x1f6   :  { %v555_v8 = vpop.eup %554  ;;  %v376_v10 = vpop.f32.mrb[12].mxu1  ;;  %v404_v11 = vpack.c.bf16 %v553_v7, %v549_v4 }
 0x1f7   :  { %v377_v12 = vadd.f32 %v376_v10, %v272_v9  ;;  %v378_v13 = vpop.f32.mrb[13].mxu1  ;;  %v405_v14 = vpack.c.bf16 %v555_v8, %v551_v6 }
 0x1f8   :  { %v379_v16 = vadd.f32 %v378_v13, %v272_v9  ;;  %v380_v17 = vpop.f32.mrb[14].mxu1 }
 0x1f9   :  { %564 = vtanh.f32 %v377_v12  ;;  %v381_v18 = vadd.f32 %v380_v17, %v277_v15  ;;  %v382_v19 = vpop.f32.mrb[15].mxu1  ;;  %421 = vmatprep.subr.bf16.mxu0 %v405_v14 }
 0x1fa   :  { %566 = vtanh.f32 %v379_v16  ;;  %v383_v20 = vadd.f32 %v382_v19, %v277_v15  ;;  %422 = vmatpush1.bf16.msra.mxu0 %v404_v11 }
 0x1fb   :  { %v557_v21 = vpop.eup %556  ;;  %568 = vtanh.f32 %v381_v18 }
 0x1fc   :  { %v559_v22 = vpop.eup %558  ;;  %570 = vtanh.f32 %v383_v20 }
 0x1fd   :  { %v561_v23 = vpop.eup %560 }
 0x1fe   :  { %v563_v24 = vpop.eup %562  ;;  %v406_v25 = vpack.c.bf16 %v561_v23, %v557_v21 }
 0x1ff   :  { %v407_v26 = vpack.c.bf16 %v563_v24, %v559_v22 }
 0x201   :  { %423 = vmatprep.subr.bf16.mxu0 %v407_v26 }
 0x202   :  { %424 = vmatpush1.bf16.msra.mxu0 %v406_v25 }
 0x203   :  { %v565_v27 = vpop.eup %564 }
 0x204   :  { %v567_v28 = vpop.eup %566 }
 0x205   :  { %v569_v29 = vpop.eup %568 }
 0x206   :  { %v571_v30 = vpop.eup %570  ;;  %v408_v31 = vpack.c.bf16 %v569_v29, %v565_v27 }
 0x207   :  { %v409_v32 = vpack.c.bf16 %v571_v30, %v567_v28 }
 0x209   :  { %425 = vmatprep.subr.bf16.mxu0 %v409_v32 }
 0x20a   :  { %426 = vmatpush1.bf16.msra.mxu0 %v408_v31 }
 0x20d   :  { %495 = vmatmul.mubr.msk.bf16.vlgmr.msra.gmra.mrb[16].mxu0 %vm299_vm1, %v401_v33 }
 0x2e0   :  { %v453_v35 = vpop.f32.mrb[16].mxu0 }
 0x2e1   :  { %v454_v36 = vadd.f32 %v453_v35, %v414_v34  ;;  %v455_v37 = vpop.f32.mrb[17].mxu0 }
 0x2e2   :  { %v456_v38 = vadd.f32 %v455_v37, %v414_v34  ;;  %v457_v39 = vpop.f32.mrb[18].mxu0 }
 0x2e3   :  { %v458_v40 = vpop.f32.mrb[19].mxu0 }
 0x2e4   :  { %v462_v41 = vcombine.low %v454_v36, %v456_v38 }
 0x2e6   :  { %464 = vst [vmem:[#allocation2] sm:$0xff] %v462_v41 }
 0x2e7   :  { %583 = shalt.err (!%p580_p4)
}
 0x2e8   :  { %s584_s15 = scalar_lea.hbm %s773_s8, 128 }
 0x2e9   :  { %p585_p5 = scmp.ne.s32.totalorder %s773_s8, %s584_s15  ;;  %p588_p6 = scmp.lt.u32.totalorder %s584_s15, %s773_s8 }
 0x2eb   :  { %p590_p7 = pnand %p588_p6, %p585_p5 }
 0x2ed   :  { %593 = shalt.err (!%p590_p7)
}
 0x2ee   :  { %474 = dma.vmem_to_hbm [thread:$0]  %s472_s13, 128, %s773_s8, [#allocation3]  }
 0x2ef   :  { %594 = dma.done.wait [#allocation3], 128  }
 0x2f0   :  { %595 = vsyncadd [#allocation3], 4294967168 }
 0x2f1   :  { %478 = vsyncpa [#allocation3], 1 }

</bundles_post_ra>
